<compile_context>
chip_gen: v7x
topology: tpu7x:2x2x1
jax: 0.10.0
libtpu: 0.0.40
codegen_flags: <defaults>
</compile_context>

<pallas_src>
import functools

import jax
import jax.numpy as jnp
from jax.experimental import pallas as pl
from jax.experimental.pallas import tpu as pltpu

BN_EPS = 1e-5
LANE = 128
VMEM_LIMIT_BYTES = 32 * 1024 * 1024  # safe on v5e/v6e (128 MiB phys) and v7x (64 MiB phys)

# Set to jnp.bfloat16 on v6e/v7x to halve weight DMA and feed the 256x256 bf16
# MXU (accumulation stays f32 via preferred_element_type). Default f32 matches
# the PyTorch module's numerics; BN/SiLU elementwise math is always f32 (v5e
# has no bf16 VPU/EUP path).
MXU_DTYPE = jnp.float32


def _round_up(x, m):
    return (x + m - 1) // m * m


# ----------------------------- fused kernel ----------------------------------

def _make_down_block_kernel(h, w, ho, wo):
    """Fused BN(eval) + SiLU + Conv1x1 + MaxPool2d(3,2,1) for one image."""

    def kernel(x_ref, scale_ref, shift_ref, w_ref, b_ref, o_ref, y_scr):
        # ---- BN (folded scale/shift) + SiLU on this image's pixels ----------
        a = x_ref[0] * scale_ref[...] + shift_ref[...]            # (H*W, Cin_p)
        # SiLU: y * sigmoid(y); exp + approx reciprocal both use the EUP slot.
        a = a * pl.reciprocal(1.0 + jnp.exp(-a), approx=True)

        # ---- 1x1 conv == matmul on the MXU, f32 accumulation ----------------
        y = jnp.dot(a.astype(w_ref.dtype), w_ref[...],
                    preferred_element_type=jnp.float32) + b_ref[...]
        cout_p = y.shape[-1]

        # ---- stage conv output in a -inf framed VMEM scratch (no HBM trip) --
        y_scr[...] = jnp.full(y_scr.shape, -jnp.inf, jnp.float32)
        y_scr[pl.ds(1, h), pl.ds(1, w), :] = y.reshape(h, w, cout_p)

        # ---- MaxPool2d(kernel=3, stride=2, padding=1) -----------------------
        # Width taps: stride-2 sublane loads straight from the scratch ref.
        t0 = y_scr[:, pl.ds(0, wo, 2), :]
        t1 = y_scr[:, pl.ds(1, wo, 2), :]
        t2 = y_scr[:, pl.ds(2, wo, 2), :]
        wmax = jnp.maximum(jnp.maximum(t0, t1), t2)               # (2*ho+2, wo, cout_p)
        # Height taps: even/odd regroup of the (outer) row axis + shift by one.
        r = wmax.reshape(ho + 1, 2, wo, cout_p)                   # rows == 2*(ho+1)
        even, odd = r[:, 0], r[:, 1]
        o_ref[0] = jnp.maximum(jnp.maximum(even[:ho], odd[:ho]), even[1:])

    return kernel


# ----------------------------- wrapper ----------------------------------------

def dense_down_block_forward(params, x_nchw):
    """DenseDownBlock forward (eval mode). x: (N, Cin, H, W) -> (N, Cout, Ho, Wo)."""
    conv_w = params['conv_w']                     # (Cout, Cin, 1, 1) torch layout
    conv_b = params['conv_b']                     # (Cout,)
    n, cin, h, w = x_nchw.shape
    cout = conv_w.shape[0]
    ho = (h - 1) // 2 + 1
    wo = (w - 1) // 2 + 1
    hp, wp = 2 * ho + 2, 2 * wo + 2               # -inf framed scratch extents
    cin_p, cout_p = _round_up(cin, LANE), _round_up(cout, LANE)

    # Layout plumbing (one-time XLA copies): NCHW -> NHWC, lane-pad channels.
    x = jnp.transpose(x_nchw, (0, 2, 3, 1)).astype(jnp.float32)
    x = jnp.pad(x, ((0, 0), (0, 0), (0, 0), (0, cin_p - cin)))
    x2d = x.reshape(n, h * w, cin_p)

    # Fold BatchNorm (eval: running stats) into per-channel scale/shift.
    # TODO(synk): training-mode BN (batch stats) and Dropout RNG not emulated.
    scale = params['bn_weight'] / jnp.sqrt(params['bn_var'] + BN_EPS)
    shift = params['bn_bias'] - params['bn_mean'] * scale
    scale = jnp.pad(scale, (0, cin_p - cin)).reshape(1, cin_p).astype(jnp.float32)
    shift = jnp.pad(shift, (0, cin_p - cin)).reshape(1, cin_p).astype(jnp.float32)

    w2 = jnp.transpose(conv_w[:, :, 0, 0], (1, 0))                # (Cin, Cout)
    w2 = jnp.pad(w2, ((0, cin_p - cin), (0, cout_p - cout))).astype(MXU_DTYPE)
    b2 = jnp.pad(conv_b, (0, cout_p - cout)).reshape(1, cout_p).astype(jnp.float32)

    # VMEM budget guard (per grid step; in/out blocks double-buffered).
    est = 4 * (2 * h * w * cin_p + cin_p * cout_p + 2 * cin_p + cout_p
               + 2 * ho * wo * cout_p + hp * wp * cout_p)
    # TODO(synk): band-tile H (manual halo DMA) for very large spatial extents.
    assert est < VMEM_LIMIT_BYTES, f"per-image blocks need ~{est} B of VMEM"

    kernel = _make_down_block_kernel(h, w, ho, wo)
    out = pl.pallas_call(
        kernel,
        out_shape=jax.ShapeDtypeStruct((n, ho, wo, cout_p), jnp.float32),
        grid=(n,),
        in_specs=[
            pl.BlockSpec((1, h * w, cin_p), lambda i: (i, 0, 0)),   # x (per image)
            pl.BlockSpec((1, cin_p), lambda i: (0, 0)),             # bn scale
            pl.BlockSpec((1, cin_p), lambda i: (0, 0)),             # bn shift
            pl.BlockSpec((cin_p, cout_p), lambda i: (0, 0)),        # conv weight
            pl.BlockSpec((1, cout_p), lambda i: (0, 0)),            # conv bias
        ],
        out_specs=pl.BlockSpec((1, ho, wo, cout_p), lambda i: (i, 0, 0, 0)),
        scratch_shapes=[pltpu.VMEM((hp, wp, cout_p), jnp.float32)],
        compiler_params=pltpu.CompilerParams(
            dimension_semantics=("parallel",),
            vmem_limit_bytes=VMEM_LIMIT_BYTES),
    )(x2d, scale, shift, w2, b2)

    out = out[:, :, :, :cout]                                      # drop lane pad
    return jnp.transpose(out, (0, 3, 1, 2))                        # NHWC -> NCHW


# ----------------------------- pure-JAX reference ------------------------------

def reference_forward(params, x_nchw):
    x = x_nchw.astype(jnp.float32)
    scale = params['bn_weight'] / jnp.sqrt(params['bn_var'] + BN_EPS)
    shift = params['bn_bias'] - params['bn_mean'] * scale
    y = x * scale[None, :, None, None] + shift[None, :, None, None]
    y = y * jax.nn.sigmoid(y)                                      # SiLU
    w2 = params['conv_w'][:, :, 0, 0]                              # (Cout, Cin)
    y = jnp.einsum('nchw,oc->nohw', y, w2,
                   precision=jax.lax.Precision.HIGHEST)
    y = y + params['conv_b'][None, :, None, None]
    return jax.lax.reduce_window(
        y, -jnp.inf, jax.lax.max,
        window_dimensions=(1, 1, 3, 3), window_strides=(1, 1, 2, 2),
        padding=((0, 0), (0, 0), (1, 1), (1, 1)))


# ----------------------------- main --------------------------------------------

if __name__ == "__main__":
    key = jax.random.PRNGKey(0)
    n, cin, h, w = 2, 36, 16, 16           # ichan = 3*features*3 with features=4
    factor_t = 1.0
    cout = int(cin * factor_t)

    ks = jax.random.split(key, 7)
    x = jax.random.normal(ks[0], (n, cin, h, w), jnp.float32)
    params = dict(
        bn_weight=1.0 + 0.1 * jax.random.normal(ks[1], (cin,), jnp.float32),
        bn_bias=0.1 * jax.random.normal(ks[2], (cin,), jnp.float32),
        bn_mean=0.1 * jax.random.normal(ks[3], (cin,), jnp.float32),
        bn_var=0.5 + jax.random.uniform(ks[4], (cin,), jnp.float32),
        conv_w=jax.random.normal(ks[5], (cout, cin, 1, 1), jnp.float32)
               / jnp.sqrt(float(cin)),
        conv_b=0.01 * jax.random.normal(ks[6], (cout,), jnp.float32),
    )

    fwd = jax.jit(functools.partial(dense_down_block_forward, params))
    out = jax.block_until_ready(fwd(x))

    assert out.shape == (n, cout, (h - 1) // 2 + 1, (w - 1) // 2 + 1), out.shape
    assert bool(jnp.all(jnp.isfinite(out)))
    ref = reference_forward(params, x)
    assert bool(jnp.allclose(out, ref, rtol=2e-2, atol=2e-2)), \
        float(jnp.max(jnp.abs(out - ref)))
    print("KERNEL_OK")
</pallas_src>

<mosaic_0001>
module attributes {stable_mosaic.version = 11 : i64} {
  func.func @kernel(%arg0: i32, %arg1: memref<1x256x128xf32, #tpu.memory_space<vmem>>, %arg2: memref<1x128xf32, #tpu.memory_space<vmem>>, %arg3: memref<1x128xf32, #tpu.memory_space<vmem>>, %arg4: memref<128x128xf32, #tpu.memory_space<vmem>>, %arg5: memref<1x128xf32, #tpu.memory_space<vmem>>, %arg6: memref<1x8x8x128xf32, #tpu.memory_space<vmem>>, %arg7: memref<18x18x128xf32, #tpu.memory_space<vmem>>) attributes {dimension_semantics = [#tpu.dimension_semantics<parallel>], iteration_bounds = array<i64: 2>, scalar_prefetch = 0 : i64, scratch_operands = 1 : i64, tpu.core_type = #tpu.core_type<tc>, window_params = [{transform_indices = @transform_0, window_bounds = array<i64: 1, 256, 128>}, {pipeline_mode = #tpu.pipeline_mode<synchronous>, transform_indices = @transform_1, window_bounds = array<i64: 1, 128>}, {pipeline_mode = #tpu.pipeline_mode<synchronous>, transform_indices = @transform_2, window_bounds = array<i64: 1, 128>}, {pipeline_mode = #tpu.pipeline_mode<synchronous>, transform_indices = @transform_3, window_bounds = array<i64: 128, 128>}, {pipeline_mode = #tpu.pipeline_mode<synchronous>, transform_indices = @transform_4, window_bounds = array<i64: 1, 128>}, {transform_indices = @transform_5, window_bounds = array<i64: 1, 8, 8, 128>}]} {
    %c0 = arith.constant 0 : index
    %c0_0 = arith.constant 0 : index
    %c0_1 = arith.constant 0 : index
    %0 = vector.load %arg1[%c0, %c0_0, %c0_1] : memref<1x256x128xf32, #tpu.memory_space<vmem>>, vector<1x256x128xf32>
    %1 = vector.shape_cast %0 : vector<1x256x128xf32> to vector<256x128xf32>
    %c0_2 = arith.constant 0 : index
    %c0_3 = arith.constant 0 : index
    %2 = vector.load %arg2[%c0_2, %c0_3] : memref<1x128xf32, #tpu.memory_space<vmem>>, vector<1x128xf32>
    %3 = vector.broadcast %2 : vector<1x128xf32> to vector<256x128xf32>
    %4 = arith.mulf %1, %3 : vector<256x128xf32>
    %c0_4 = arith.constant 0 : index
    %c0_5 = arith.constant 0 : index
    %5 = vector.load %arg3[%c0_4, %c0_5] : memref<1x128xf32, #tpu.memory_space<vmem>>, vector<1x128xf32>
    %6 = vector.broadcast %5 : vector<1x128xf32> to vector<256x128xf32>
    %7 = arith.addf %4, %6 : vector<256x128xf32>
    %cst = arith.constant 0.000000e+00 : f32
    %8 = vector.broadcast %cst : f32 to vector<256x128xf32>
    %9 = arith.subf %8, %7 : vector<256x128xf32>
    %10 = math.exp %9 : vector<256x128xf32>
    %cst_6 = arith.constant 1.000000e+00 : f32
    %11 = vector.broadcast %cst_6 : f32 to vector<256x128xf32>
    %12 = arith.addf %11, %10 : vector<256x128xf32>
    %13 = tpu.reciprocal %12 {approx = true} : vector<256x128xf32> -> vector<256x128xf32>
    %14 = arith.mulf %7, %13 : vector<256x128xf32>
    %c0_7 = arith.constant 0 : index
    %c0_8 = arith.constant 0 : index
    %15 = vector.load %arg4[%c0_7, %c0_8] : memref<128x128xf32, #tpu.memory_space<vmem>>, vector<128x128xf32>
    %cst_9 = arith.constant dense<0.000000e+00> : vector<256x128xf32>
    %16 = tpu.matmul %14, %15, %cst_9 {dimension_numbers = #tpu.dot_dimension_numbers<[1], [0], [0], [1], [0, 0, 1, 1], [], []>} : vector<256x128xf32>, vector<128x128xf32>, vector<256x128xf32> -> vector<256x128xf32>
    %c0_10 = arith.constant 0 : index
    %c0_11 = arith.constant 0 : index
    %17 = vector.load %arg5[%c0_10, %c0_11] : memref<1x128xf32, #tpu.memory_space<vmem>>, vector<1x128xf32>
    %18 = vector.broadcast %17 : vector<1x128xf32> to vector<256x128xf32>
    %19 = arith.addf %16, %18 : vector<256x128xf32>
    %cst_12 = arith.constant 0xFF800000 : f32
    %20 = vector.broadcast %cst_12 : f32 to vector<18x18x128xf32>
    %c0_13 = arith.constant 0 : index
    %c0_14 = arith.constant 0 : index
    %c0_15 = arith.constant 0 : index
    %21 = vector.load %arg7[%c0_13, %c0_14, %c0_15] : memref<18x18x128xf32, #tpu.memory_space<vmem>>, vector<18x18x128xf32>
    tpu.vector_store %arg7[%c0_13, %c0_14, %c0_15], %20 {strides = array<i32>} : memref<18x18x128xf32, #tpu.memory_space<vmem>>, vector<18x18x128xf32>,
    %22 = vector.shape_cast %19 : vector<256x128xf32> to vector<16x16x128xf32>
    %c1 = arith.constant 1 : index
    %c1_16 = arith.constant 1 : index
    %c0_17 = arith.constant 0 : index
    %23 = vector.load %arg7[%c1, %c1_16, %c0_17] : memref<18x18x128xf32, #tpu.memory_space<vmem>>, vector<16x16x128xf32>
    tpu.vector_store %arg7[%c1, %c1_16, %c0_17], %22 {strides = array<i32>} : memref<18x18x128xf32, #tpu.memory_space<vmem>>, vector<16x16x128xf32>,
    %c0_18 = arith.constant 0 : index
    %c0_19 = arith.constant 0 : index
    %c0_20 = arith.constant 0 : index
    %24 = tpu.strided_load %arg7[%c0_18, %c0_19, %c0_20] {strides = array<i32: 1, 2, 1>} : memref<18x18x128xf32, #tpu.memory_space<vmem>>, vector<18x8x128xf32>
    %c0_21 = arith.constant 0 : index
    %c1_22 = arith.constant 1 : index
    %c0_23 = arith.constant 0 : index
    %25 = tpu.strided_load %arg7[%c0_21, %c1_22, %c0_23] {strides = array<i32: 1, 2, 1>} : memref<18x18x128xf32, #tpu.memory_space<vmem>>, vector<18x8x128xf32>
    %c0_24 = arith.constant 0 : index
    %c2 = arith.constant 2 : index
    %c0_25 = arith.constant 0 : index
    %26 = tpu.strided_load %arg7[%c0_24, %c2, %c0_25] {strides = array<i32: 1, 2, 1>} : memref<18x18x128xf32, #tpu.memory_space<vmem>>, vector<18x8x128xf32>
    %27 = arith.maximumf %24, %25 : vector<18x8x128xf32>
    %28 = arith.maximumf %27, %26 : vector<18x8x128xf32>
    %29 = vector.shape_cast %28 : vector<18x8x128xf32> to vector<9x2x8x128xf32>
    %30 = vector.extract_strided_slice %29 {offsets = [0, 0, 0, 0], sizes = [9, 1, 8, 128], strides = [1, 1, 1, 1]} : vector<9x2x8x128xf32> to vector<9x1x8x128xf32>
    %31 = vector.shape_cast %30 : vector<9x1x8x128xf32> to vector<9x8x128xf32>
    %32 = vector.extract_strided_slice %29 {offsets = [0, 1, 0, 0], sizes = [9, 1, 8, 128], strides = [1, 1, 1, 1]} : vector<9x2x8x128xf32> to vector<9x1x8x128xf32>
    %33 = vector.shape_cast %32 : vector<9x1x8x128xf32> to vector<9x8x128xf32>
    %34 = vector.extract_strided_slice %31 {offsets = [0, 0, 0], sizes = [8, 8, 128], strides = [1, 1, 1]} : vector<9x8x128xf32> to vector<8x8x128xf32>
    %35 = vector.extract_strided_slice %33 {offsets = [0, 0, 0], sizes = [8, 8, 128], strides = [1, 1, 1]} : vector<9x8x128xf32> to vector<8x8x128xf32>
    %36 = arith.maximumf %34, %35 : vector<8x8x128xf32>
    %37 = vector.extract_strided_slice %31 {offsets = [1, 0, 0], sizes = [8, 8, 128], strides = [1, 1, 1]} : vector<9x8x128xf32> to vector<8x8x128xf32>
    %38 = arith.maximumf %36, %37 : vector<8x8x128xf32>
    %c0_26 = arith.constant 0 : index
    %c0_27 = arith.constant 0 : index
    %c0_28 = arith.constant 0 : index
    %c0_29 = arith.constant 0 : index
    %39 = vector.load %arg6[%c0_26, %c0_27, %c0_28, %c0_29] : memref<1x8x8x128xf32, #tpu.memory_space<vmem>>, vector<1x8x8x128xf32>
    %40 = vector.shape_cast %39 : vector<1x8x8x128xf32> to vector<8x8x128xf32>
    %41 = vector.shape_cast %38 : vector<8x8x128xf32> to vector<1x8x8x128xf32>
    tpu.vector_store %arg6[%c0_26, %c0_27, %c0_28, %c0_29], %41 {strides = array<i32>} : memref<1x8x8x128xf32, #tpu.memory_space<vmem>>, vector<1x8x8x128xf32>,
    return
  }
  func.func @transform_0(%arg0: i32) -> (i32, i32, i32) {
    %c0_i32 = arith.constant 0 : i32
    %c0_i32_0 = arith.constant 0 : i32
    %c0_i32_1 = arith.constant 0 : i32
    return %arg0, %c0_i32, %c0_i32_0 : i32, i32, i32
  }
  func.func @transform_1(%arg0: i32) -> (i32, i32) {
    %c0_i32 = arith.constant 0 : i32
    %c0_i32_0 = arith.constant 0 : i32
    %c0_i32_1 = arith.constant 0 : i32
    return %c0_i32, %c0_i32_0 : i32, i32
  }
  func.func @transform_2(%arg0: i32) -> (i32, i32) {
    %c0_i32 = arith.constant 0 : i32
    %c0_i32_0 = arith.constant 0 : i32
    %c0_i32_1 = arith.constant 0 : i32
    return %c0_i32, %c0_i32_0 : i32, i32
  }
  func.func @transform_3(%arg0: i32) -> (i32, i32) {
    %c0_i32 = arith.constant 0 : i32
    %c0_i32_0 = arith.constant 0 : i32
    %c0_i32_1 = arith.constant 0 : i32
    return %c0_i32, %c0_i32_0 : i32, i32
  }
  func.func @transform_4(%arg0: i32) -> (i32, i32) {
    %c0_i32 = arith.constant 0 : i32
    %c0_i32_0 = arith.constant 0 : i32
    %c0_i32_1 = arith.constant 0 : i32
    return %c0_i32, %c0_i32_0 : i32, i32
  }
  func.func @transform_5(%arg0: i32) -> (i32, i32, i32, i32) {
    %c0_i32 = arith.constant 0 : i32
    %c0_i32_0 = arith.constant 0 : i32
    %c0_i32_1 = arith.constant 0 : i32
    %c0_i32_2 = arith.constant 0 : i32
    return %arg0, %c0_i32, %c0_i32_0, %c0_i32_1 : i32, i32, i32, i32
  }
}

</mosaic_0001>

<bundles_post_ra>
// kernel: dense_down_block_forward.1
= control target key start
LH: loop header
LB: loop body
LE: loop exit
PB: predicated region body
PF: predicated region fallthrough
CT: control target
= control target key end

     0   :  { %s1444_s18 = smov 0   ;;  %s1831_s0 = inlined_call_operand.vmem [shape: f32[2,256,128], index: 0, kind: input, shape index: {}]   ;;  %s1832_s1 = inlined_call_operand.vmem [shape: f32[1,128], index: 1, kind: input, shape index: {}]   ;;  %s1833_s2 = inlined_call_operand.vmem [shape: f32[1,128], index: 2, kind: input, shape index: {}]   ;;  %s1834_s3 = inlined_call_operand.vmem [shape: f32[128,128], index: 3, kind: input, shape index: {}]   ;;  %s1835_s4 = inlined_call_operand.vmem [shape: f32[1,128], index: 4, kind: input, shape index: {}]   ;;  %s1836_s5 = inlined_call_operand.vmem [shape: f32[2,8,8,128], index: 5, kind: output, shape index: {}]  }
   0x1 LB: > { %s1076_s19 = sadd.s32 4294967295, %s1411_s18   ;;  %p1080_p0 = scmp.ge.s32.totalorder %s1411_s18, 1  ;;  %s1411_s18 = sphi %s1444_s18, %s15_s18  }
   0x2   : > { %p187_p1 = scmp.lt.s32.totalorder %s1411_s18, 3 }
   0x4   : > { %p188_p2 = pnand %p1080_p0, %p187_p1 }
   0x5   : > { %v527_v0 = vld [vmem:[%s1834_s3] sm:$0xff] (!%p188_p2)  ;;  %v528_v1 = vld [vmem:[%s1834_s3 + $0x8] sm:$0xff] (!%p188_p2)  ;;  %v529_v2 = vld [vmem:[%s1834_s3 + $0x10] sm:$0xff] (!%p188_p2)  ;;  %p215_p3 = scmp.lt.s32.totalorder (!%p188_p2), %s1076_s19, 1 }
   0x6   : > { %191 = sbr.rel (%p188_p2) target bundleno = 340 (0x154), region = 40  ;;  %v1220_v3 = vpack.c.bf16 (!%p188_p2), %v528_v1, %v527_v0  ;;  %v530_v4 = vld [vmem:[%s1834_s3 + $0x18] sm:$0xff] (!%p188_p2)  ;;  %v531_v5 = vld [vmem:[%s1834_s3 + $0x20] sm:$0xff] (!%p188_p2)  ;;  %v532_v6 = vld [vmem:[%s1834_s3 + $0x28] sm:$0xff] (!%p188_p2) }
   0x7   : > { %v1224_v7 = vpack.c.bf16 (!%p188_p2), %v530_v4, %v529_v2  ;;  %v533_v8 = vld [vmem:[%s1834_s3 + $0x30] sm:$0xff] (!%p188_p2)  ;;  %v534_v9 = vld [vmem:[%s1834_s3 + $0x38] sm:$0xff] (!%p188_p2)  ;;  %v535_v10 = vld [vmem:[%s1834_s3 + $0x40] sm:$0xff] (!%p188_p2)  ;;  %v1228_v16 = vpack.c.bf16 (!%p188_p2), %v532_v6, %v531_v5 }
   0x8   : > { %1221 = vmatprep.subr.bf16.mxu0 (!%p188_p2), %v1220_v3  ;;  %1252 = vmatprep.subr.bf16.mxu1 (!%p188_p2), %v1220_v3  ;;  %v536_v11 = vld [vmem:[%s1834_s3 + $0x48] sm:$0xff] (!%p188_p2)  ;;  %v537_v12 = vld [vmem:[%s1834_s3 + $0x50] sm:$0xff] (!%p188_p2)  ;;  %v538_v13 = vld [vmem:[%s1834_s3 + $0x58] sm:$0xff] (!%p188_p2)  ;;  %v1232_v19 = vpack.c.bf16 (!%p188_p2), %v534_v9, %v533_v8 }
   0x9   : > { %1223 = vmatpush3.bf16.msra.mxu0 (!%p188_p2), %v1220_v3  ;;  %1260 = vmatpush3.bf16.msra.mxu1 (!%p188_p2), %v1220_v3  ;;  %v539_v14 = vld [vmem:[%s1834_s3 + $0x60] sm:$0xff] (!%p188_p2)  ;;  %v540_v15 = vld [vmem:[%s1834_s3 + $0x68] sm:$0xff] (!%p188_p2)  ;;  %v1512_v20 = vpack.c.bf16 (!%p188_p2), %v536_v11, %v535_v10  ;;  %v1514_v21 = vpack.c.bf16 (!%p188_p2), %v538_v13, %v537_v12 }
   0xa   : > { %1225 = vmatprep.subr.bf16.mxu0 (!%p188_p2), %v1224_v7  ;;  %1253 = vmatprep.subr.bf16.mxu1 (!%p188_p2), %v1224_v7  ;;  %v1505_v17 = vld [vmem:[%s1832_s1] ss:$0 sm:$0xff] (!%p188_p2)  ;;  %v1519_v25 = vpack.c.bf16 (!%p188_p2), %v540_v15, %v539_v14 }
   0xb   : > { %v1510_v18 = vld [vmem:[%s1833_s2] ss:$0 sm:$0xff] (!%p188_p2) }
   0xd   : > { %s1838_s19 = smov (!%p215_p3, %s1076_s19), 1  ;;  %1227 = vmatpush3.bf16.msra.mxu0 %v1224_v7  ;;  %1261 = vmatpush3.bf16.msra.mxu1 %v1224_v7 }
   0xe   : > { %s1090_s25 = sshll.u32 %s1838_s19, 8  ;;  %1229 = vmatprep.subr.bf16.mxu0 %v1228_v16  ;;  %1254 = vmatprep.subr.bf16.mxu1 %v1228_v16  ;;  %s1091_s14 = sshll.u32 %s1838_s19, 6 }
   0xf   : > { %s1500_s28 = scalar_lea.vmem %s1831_s0, %s1090_s25  ;;  %s1792_s17 = scalar_lea.vmem %s1836_s5, %s1091_s14 }
  0x10   : > { %v225_v22 = vld [vmem:[%s1500_s28] sm:$0xff]  ;;  %v226_v24 = vld [vmem:[%s1500_s28 + $0x8] sm:$0xff]  ;;  %v227_v30 = vld [vmem:[%s1500_s28 + $0x10] sm:$0xff] }
  0x11   : > { %v241_v23 = vld [vmem:[%s1500_s28 + $0x80] sm:$0xff]  ;;  %v264_v26 = vmul.f32 %v1505_v17, %v225_v22  ;;  %v265_v28 = vmul.f32 %v1505_v17, %v226_v24  ;;  %v242_v29 = vld [vmem:[%s1500_s28 + $0x88] sm:$0xff]  ;;  %v243_v31 = vld [vmem:[%s1500_s28 + $0x90] sm:$0xff]  ;;  %v266_v33 = vmul.f32 %v1505_v17, %v227_v30  ;;  %1231 = vmatpush3.bf16.msra.mxu0 %v1228_v16  ;;  %1262 = vmatpush3.bf16.msra.mxu1 %v1228_v16 }
  0x12   : > { %v280_v27 = vmul.f32 %v1505_v17, %v241_v23  ;;  %v281_v32 = vmul.f32 %v1505_v17, %v242_v29  ;;  %v282_v34 = vmul.f32 %v1505_v17, %v243_v31  ;;  %v228_v35 = vld [vmem:[%s1500_s28 + $0x18] sm:$0xff]  ;;  %v229_v48 = vld [vmem:[%s1500_s28 + $0x20] sm:$0xff]  ;;  %v230_v54 = vld [vmem:[%s1500_s28 + $0x28] sm:$0xff]  ;;  %1233 = vmatprep.subr.bf16.mxu0 %v1232_v19  ;;  %1255 = vmatprep.subr.bf16.mxu1 %v1232_v19 }
  0x13   : > { %v244_v36 = vld [vmem:[%s1500_s28 + $0x98] sm:$0xff]  ;;  %v1533_v37 = vadd.f32 %v1510_v18, %v264_v26  ;;  %v1539_v39 = vadd.f32 %v1510_v18, %v265_v28  ;;  %v1545_v41 = vadd.f32 %v1510_v18, %v266_v33  ;;  %v267_v43 = vmul.f32 %v1505_v17, %v228_v35  ;;  %v245_v53 = vld [vmem:[%s1500_s28 + $0xa0] sm:$0xff]  ;;  %v246_v55 = vld [vmem:[%s1500_s28 + $0xa8] sm:$0xff] }
  0x14   : > { %v1536_v38 = vadd.f32 %v1510_v18, %v280_v27  ;;  %v1542_v40 = vadd.f32 %v1510_v18, %v281_v32  ;;  %v1548_v42 = vadd.f32 %v1510_v18, %v282_v34  ;;  %v283_v47 = vmul.f32 %v1505_v17, %v244_v36  ;;  %v231_v6 = vld [vmem:[%s1500_s28 + $0x30] sm:$0xff]  ;;  %v248_v26 = vld [vmem:[%s1500_s28 + $0xb8] sm:$0xff]  ;;  %v249_v30 = vld [vmem:[%s1500_s28 + $0xc0] sm:$0xff] }
  0x15   : > { %v335_v44 = vsub.f32 0.0, %v1533_v37  ;;  %v336_v46 = vsub.f32 0.0, %v1539_v39  ;;  %v337_v50 = vsub.f32 0.0, %v1545_v41  ;;  %v1560_v52 = vadd.f32 %v1510_v18, %v267_v43  ;;  %1235 = vmatpush3.bf16.msra.mxu0 %v1232_v19  ;;  %1263 = vmatpush3.bf16.msra.mxu1 %v1232_v19  ;;  %v247_v7 = vld [vmem:[%s1500_s28 + $0xb0] sm:$0xff]  ;;  %v232_v19 = vld [vmem:[%s1500_s28 + $0x38] sm:$0xff] }
  0x16   : > { %v351_v45 = vsub.f32 0.0, %v1536_v38  ;;  %v352_v49 = vsub.f32 0.0, %v1542_v40  ;;  %v353_v51 = vsub.f32 0.0, %v1548_v42  ;;  %v1566_v59 = vadd.f32 %v1510_v18, %v283_v47  ;;  %1237 = vmatprep.subr.bf16.mxu0 %v1512_v20  ;;  %1256 = vmatprep.subr.bf16.mxu1 %v1512_v20  ;;  %v541_v31 = vld [vmem:[%s1834_s3 + $0x70] sm:$0xff]  ;;  %v542_v32 = vld [vmem:[%s1834_s3 + $0x78] sm:$0xff] }
  0x17   : > { %v367_v56 = vmul.f32 1.442695, %v335_v44  ;;  %v369_v58 = vmul.f32 1.442695, %v336_v46  ;;  %v371_v61 = vmul.f32 1.442695, %v337_v50  ;;  %v268_v63 = vmul.f32 %v1505_v17, %v229_v48 }
  0x18   : > { %v399_v57 = vmul.f32 1.442695, %v351_v45  ;;  %v401_v60 = vmul.f32 1.442695, %v352_v49  ;;  %v403_v62 = vmul.f32 1.442695, %v353_v51  ;;  %v284_v2 = vmul.f32 %v1505_v17, %v245_v53 }
  0x19   : > { %1277 = vpow2.f32 %v367_v56  ;;  %v338_v0 = vsub.f32 0.0, %v1560_v52  ;;  %v354_v1 = vsub.f32 0.0, %v1566_v59  ;;  %v1573_v3 = vadd.f32 %v1510_v18, %v268_v63  ;;  %1239 = vmatpush3.bf16.msra.mxu0 %v1512_v20  ;;  %1264 = vmatpush3.bf16.msra.mxu1 %v1512_v20  ;;  %v233_v20 = vld [vmem:[%s1500_s28 + $0x40] sm:$0xff] }
  0x1a   : > { %1279 = vpow2.f32 %v399_v57  ;;  %v269_v4 = vmul.f32 %v1505_v17, %v230_v54  ;;  %v285_v5 = vmul.f32 %v1505_v17, %v246_v55  ;;  %v1582_v10 = vadd.f32 %v1510_v18, %v284_v2  ;;  %1241 = vmatprep.subr.bf16.mxu0 %v1514_v21  ;;  %1257 = vmatprep.subr.bf16.mxu1 %v1514_v21 }
  0x1b   : > { %1281 = vpow2.f32 %v369_v58  ;;  %v373_v8 = vmul.f32 1.442695, %v338_v0  ;;  %v405_v9 = vmul.f32 1.442695, %v354_v1  ;;  %v339_v11 = vsub.f32 0.0, %v1573_v3  ;;  %v250_v1 = vld [vmem:[%s1500_s28 + $0xc8] sm:$0xff] }
  0x1c   : > { %1283 = vpow2.f32 %v401_v60  ;;  %v1586_v12 = vadd.f32 %v1510_v18, %v269_v4  ;;  %v1589_v13 = vadd.f32 %v1510_v18, %v285_v5  ;;  %v355_v14 = vsub.f32 0.0, %v1582_v10 }
  0x1d   : > { %1285 = vpow2.f32 %v371_v61  ;;  %v270_v15 = vmul.f32 %v1505_v17, %v231_v6  ;;  %v286_v16 = vmul.f32 %v1505_v17, %v247_v7  ;;  %v375_v22 = vmul.f32 1.442695, %v339_v11  ;;  %1243 = vmatpush3.bf16.msra.mxu0 %v1514_v21  ;;  %1265 = vmatpush3.bf16.msra.mxu1 %v1514_v21  ;;  %v234_v61 = vld [vmem:[%s1500_s28 + $0x48] sm:$0xff]  ;;  %v235_v7 = vld [vmem:[%s1500_s28 + $0x50] sm:$0xff] }
  0x1e   : > { %1287 = vpow2.f32 %v403_v62  ;;  %v340_v23 = vsub.f32 0.0, %v1586_v12  ;;  %v356_v24 = vsub.f32 0.0, %v1589_v13  ;;  %v407_v27 = vmul.f32 1.442695, %v355_v14  ;;  %1245 = vmatprep.subr.bf16.mxu0 %v1519_v25  ;;  %1258 = vmatprep.subr.bf16.mxu1 %v1519_v25  ;;  %v251_v14 = vld [vmem:[%s1500_s28 + $0xd0] sm:$0xff] }
  0x1f   : > { %1289 = vpow2.f32 %v373_v8  ;;  %v1603_v28 = vadd.f32 %v1510_v18, %v270_v15  ;;  %v1606_v29 = vadd.f32 %v1510_v18, %v286_v16  ;;  %v271_v35 = vmul.f32 %v1505_v17, %v232_v19 }
  0x20   : > { %1291 = vpow2.f32 %v405_v9  ;;  %v377_v33 = vmul.f32 1.442695, %v340_v23  ;;  %v409_v34 = vmul.f32 1.442695, %v356_v24  ;;  %v287_v44 = vmul.f32 %v1505_v17, %v248_v26 }
  0x21   : > { %1293 = vpow2.f32 %v375_v22  ;;  %v341_v36 = vsub.f32 0.0, %v1603_v28  ;;  %v357_v43 = vsub.f32 0.0, %v1606_v29  ;;  %v1623_v45 = vadd.f32 %v1510_v18, %v271_v35  ;;  %1247 = vmatpush3.bf16.msra.mxu0 %v1519_v25  ;;  %1266 = vmatpush3.bf16.msra.mxu1 %v1519_v25 }
  0x22   : > { %1295 = vpow2.f32 %v407_v27  ;;  %v272_v46 = vmul.f32 %v1505_v17, %v233_v20  ;;  %v288_v47 = vmul.f32 %v1505_v17, %v249_v30  ;;  %v1248_v49 = vpack.c.bf16 %v542_v32, %v541_v31 }
  0x23   : > { %v1278_v48 = vpop.eup %1277  ;;  %1297 = vpow2.f32 %v377_v33  ;;  %v379_v50 = vmul.f32 1.442695, %v341_v36  ;;  %v1630_v51 = vadd.f32 %v1510_v18, %v287_v44  ;;  %v342_v54 = vsub.f32 0.0, %v1623_v45 }
  0x24   : > { %v1280_v21 = vpop.eup %1279  ;;  %v431_v53 = vadd.f32 1.0, %v1278_v48  ;;  %1299 = vpow2.f32 %v409_v34  ;;  %v1634_v55 = vadd.f32 %v1510_v18, %v272_v46  ;;  %v1638_v60 = vadd.f32 %v1510_v18, %v288_v47  ;;  %1249 = vmatprep.subr.bf16.mxu0 %v1248_v49  ;;  %1259 = vmatprep.subr.bf16.mxu1 %v1248_v49  ;;  %v236_v48 = vld [vmem:[%s1500_s28 + $0x58] sm:$0xff] }
  0x25   : > { %v1282_v56 = vpop.eup %1281  ;;  %v447_v57 = vadd.f32 1.0, %v1280_v21  ;;  %1301 = vpow2.f32 %v379_v50  ;;  %v358_v58 = vsub.f32 0.0, %v1630_v51  ;;  %v1643_v0 = vmul.f32 1.442695, %v357_v43  ;;  %1251 = vmatpush3.bf16.msra.mxu0 %v1248_v49  ;;  %1267 = vmatpush3.bf16.msra.mxu1 %v1248_v49 }
  0x26   : > { %v1284_v62 = vpop.eup %1283  ;;  %1303 = vrcp.f32 %v431_v53  ;;  %v432_v63 = vadd.f32 1.0, %v1282_v56  ;;  %v1646_v5 = vmul.f32 1.442695, %v342_v54  ;;  %v343_v6 = vsub.f32 0.0, %v1634_v55  ;;  %v252_v54 = vld [vmem:[%s1500_s28 + $0xd8] sm:$0xff] }
  0x27   : > { %v1286_v2 = vpop.eup %1285  ;;  %1305 = vrcp.f32 %v447_v57  ;;  %v448_v4 = vadd.f32 1.0, %v1284_v62  ;;  %v1650_v25 = vmul.f32 1.442695, %v358_v58  ;;  %v273_v11 = vmul.f32 %v1505_v17, %v234_v61  ;;  %v237_v62 = vld [vmem:[%s1500_s28 + $0x60] sm:$0xff] }
  0x28   : > { %v1288_v8 = vpop.eup %1287  ;;  %1307 = vrcp.f32 %v432_v63  ;;  %v433_v9 = vadd.f32 1.0, %v1286_v2  ;;  %v359_v19 = vsub.f32 0.0, %v1638_v60  ;;  %v289_v22 = vmul.f32 %v1505_v17, %v250_v1 }
  0x29   : > { %v1290_v15 = vpop.eup %1289  ;;  %1309 = vrcp.f32 %v448_v4  ;;  %v449_v16 = vadd.f32 1.0, %v1288_v8  ;;  %v1657_v26 = vadd.f32 %v1510_v18, %v273_v11  ;;  %v274_v27 = vmul.f32 %v1505_v17, %v235_v7  ;;  %v253_v7 = vld [vmem:[%s1500_s28 + $0xe0] sm:$0xff] }
  0x2a   : > { %v1292_v23 = vpop.eup %1291  ;;  %1311 = vrcp.f32 %v433_v9  ;;  %v434_v24 = vadd.f32 1.0, %v1290_v15  ;;  %v1661_v31 = vadd.f32 %v1510_v18, %v289_v22  ;;  %v290_v32 = vmul.f32 %v1505_v17, %v251_v14 }
  0x2b   : > { %v1294_v20 = vpop.eup %1293  ;;  %1313 = vrcp.f32 %v449_v16  ;;  %v450_v30 = vadd.f32 1.0, %v1292_v23  ;;  %v344_v35 = vsub.f32 0.0, %v1657_v26  ;;  %v1666_v36 = vadd.f32 %v1510_v18, %v274_v27 }
  0x2c   : > { %v1296_v33 = vpop.eup %1295  ;;  %1315 = vrcp.f32 %v434_v24  ;;  %v435_v34 = vadd.f32 1.0, %v1294_v20  ;;  %v360_v46 = vsub.f32 0.0, %v1661_v31  ;;  %v1670_v47 = vadd.f32 %v1510_v18, %v290_v32 }
  0x2d   : > { %v1298_v43 = vpop.eup %1297  ;;  %1317 = vrcp.f32 %v450_v30  ;;  %v451_v44 = vadd.f32 1.0, %v1296_v33  ;;  %v383_v21 = vmul.f32 1.442695, %v343_v6  ;;  %v415_v53 = vmul.f32 1.442695, %v359_v19 }
  0x2e   : > { %v1300_v49 = vpop.eup %1299  ;;  %1319 = vrcp.f32 %v435_v34  ;;  %v436_v50 = vadd.f32 1.0, %v1298_v43  ;;  %v385_v58 = vmul.f32 1.442695, %v344_v35  ;;  %v345_v61 = vsub.f32 0.0, %v1666_v36 }
  0x2f   : > { %v1302_v56 = vpop.eup %1301  ;;  %1321 = vrcp.f32 %v451_v44  ;;  %v452_v57 = vadd.f32 1.0, %v1300_v49  ;;  %v417_v2 = vmul.f32 1.442695, %v360_v46  ;;  %v275_v4 = vmul.f32 %v1505_v17, %v236_v48 }
  0x30   : > { %v1304_v63 = vpop.eup %1303  ;;  %1323 = vrcp.f32 %v436_v50  ;;  %v437_v1 = vadd.f32 1.0, %v1302_v56  ;;  %v361_v6 = vsub.f32 0.0, %v1670_v47  ;;  %v291_v11 = vmul.f32 %v1505_v17, %v252_v54  ;;  %v238_v56 = vld [vmem:[%s1500_s28 + $0x68] sm:$0xff] }
  0x31   : > { %v1306_v8 = vpop.eup %1305  ;;  %v495_v9 = vmul.f32 %v1304_v63, %v1533_v37  ;;  %1325 = vrcp.f32 %v452_v57  ;;  %v1683_v16 = vadd.f32 %v1510_v18, %v275_v4  ;;  %v276_v19 = vmul.f32 %v1505_v17, %v237_v62  ;;  %v239_v63 = vld [vmem:[%s1500_s28 + $0x70] sm:$0xff] }
  0x32   : > { %v1308_v14 = vpop.eup %1307  ;;  %v511_v15 = vmul.f32 %v1306_v8, %v1536_v38  ;;  %1327 = vrcp.f32 %v437_v1  ;;  %v1689_v37 = vadd.f32 %v1510_v18, %v291_v11  ;;  %v292_v24 = vmul.f32 %v1505_v17, %v253_v7  ;;  %v255_v4 = vld [vmem:[%s1500_s28 + $0xf0] sm:$0xff] }
  0x33   : > { %v1310_v22 = vpop.eup %1309  ;;  %1172 = vmatprep.mubr.f32.mxu0 %v495_v9  ;;  %v496_v23 = vmul.f32 %v1308_v14, %v1539_v39  ;;  %1329 = vpow2.f32 %v1643_v0  ;;  %v346_v20 = vsub.f32 0.0, %v1683_v16  ;;  %v1696_v30 = vadd.f32 %v1510_v18, %v276_v19  ;;  %v240_v9 = vld [vmem:[%s1500_s28 + $0x78] sm:$0xff] }
  0x34   : > { %v1312_v27 = vpop.eup %1311  ;;  %1196 = vmatprep.mubr.f32.mxu1 %v511_v15  ;;  %v512_v38 = vmul.f32 %v1310_v22, %v1542_v40  ;;  %1331 = vpow2.f32 %v1646_v5  ;;  %v362_v0 = vsub.f32 0.0, %v1689_v37  ;;  %v1702_v33 = vadd.f32 %v1510_v18, %v292_v24  ;;  %v256_v14 = vld [vmem:[%s1500_s28 + $0xf8] sm:$0xff] }
  0x35   : > { %v1314_v32 = vpop.eup %1313  ;;  %1173 = vmatmul.mubr.f32.vlgmr.msra.gmra.mrb[0].mxu0 %v496_v23  ;;  %v497_v39 = vmul.f32 %v1312_v27, %v1545_v41  ;;  %1333 = vpow2.f32 %v1650_v25  ;;  %v387_v5 = vmul.f32 1.442695, %v345_v61  ;;  %v347_v35 = vsub.f32 0.0, %v1696_v30  ;;  %v254_v61 = vld [vmem:[%s1500_s28 + $0xe8] sm:$0xff] }
  0x36   : > { %v1316_v34 = vpop.eup %1315  ;;  %1197 = vmatmul.mubr.f32.vlgmr.msra.gmra.mrb[0].mxu1 %v512_v38  ;;  %v513_v40 = vmul.f32 %v1314_v32, %v1548_v42  ;;  %1335 = vpow2.f32 %v383_v21  ;;  %v419_v41 = vmul.f32 1.442695, %v361_v6  ;;  %v363_v25 = vsub.f32 0.0, %v1702_v33 }
  0x37   : > { %v1318_v43 = vpop.eup %1317  ;;  %1175 = vmatprep.mubr.f32.mxu0 %v497_v39  ;;  %v498_v44 = vmul.f32 %v1316_v34, %v1560_v52  ;;  %1337 = vpow2.f32 %v415_v53  ;;  %v389_v49 = vmul.f32 1.442695, %v346_v20  ;;  %v421_v21 = vmul.f32 1.442695, %v362_v0 }
  0x38   : > { %v1320_v46 = vpop.eup %1319  ;;  %1199 = vmatprep.mubr.f32.mxu1 %v513_v40  ;;  %v514_v48 = vmul.f32 %v1318_v43, %v1566_v59  ;;  %1339 = vpow2.f32 %v385_v58  ;;  %v391_v53 = vmul.f32 1.442695, %v347_v35  ;;  %v423_v58 = vmul.f32 1.442695, %v363_v25 }
  0x39   : > { %v1322_v42 = vpop.eup %1321  ;;  %1176 = vmatmul.mubr.f32.gmra.mrb[2].mxu0 %v498_v44  ;;  %v499_v50 = vmul.f32 %v1320_v46, %v1573_v3  ;;  %1341 = vpow2.f32 %v417_v2  ;;  %v277_v2 = vmul.f32 %v1505_v17, %v238_v56  ;;  %v293_v8 = vmul.f32 %v1505_v17, %v254_v61 }
  0x3a   : > { %v1324_v54 = vpop.eup %1323  ;;  %1200 = vmatmul.mubr.f32.gmra.mrb[2].mxu1 %v514_v48  ;;  %v515_v52 = vmul.f32 %v1322_v42, %v1582_v10  ;;  %1343 = vpow2.f32 %v387_v5  ;;  %v278_v11 = vmul.f32 %v1505_v17, %v239_v63  ;;  %v294_v19 = vmul.f32 %v1505_v17, %v255_v4 }
  0x3b   : > { %v1326_v57 = vpop.eup %1325  ;;  %1178 = vmatprep.mubr.f32.mxu0 %v499_v50  ;;  %v500_v59 = vmul.f32 %v1324_v54, %v1586_v12  ;;  %1345 = vpow2.f32 %v419_v41  ;;  %v1725_v24 = vadd.f32 %v1510_v18, %v277_v2  ;;  %v279_v27 = vmul.f32 %v1505_v17, %v240_v9 }
  0x3c   : > { %v1328_v62 = vpop.eup %1327  ;;  %1202 = vmatprep.mubr.f32.mxu1 %v515_v52  ;;  %v516_v3 = vmul.f32 %v1326_v57, %v1589_v13  ;;  %1347 = vpow2.f32 %v389_v49  ;;  %v1729_v32 = vadd.f32 %v1510_v18, %v293_v8  ;;  %v295_v39 = vmul.f32 %v1505_v17, %v256_v14 }
  0x3d   : > { %v1330_v1 = vpop.eup %1329  ;;  %1179 = vmatmul.mubr.f32.gmra.mrb[4].mxu0 %v500_v59  ;;  %v501_v10 = vmul.f32 %v1328_v62, %v1603_v28  ;;  %1349 = vpow2.f32 %v421_v21  ;;  %v1733_v40 = vadd.f32 %v1510_v18, %v278_v11  ;;  %v1736_v43 = vadd.f32 %v1510_v18, %v294_v19 }
  0x3e   : > { %v1332_v12 = vpop.eup %1331  ;;  %1203 = vmatmul.mubr.f32.gmra.mrb[4].mxu1 %v516_v3  ;;  %v453_v7 = vadd.f32 1.0, %v1330_v1  ;;  %1351 = vpow2.f32 %v391_v53  ;;  %v348_v25 = vsub.f32 0.0, %v1725_v24  ;;  %v1740_v46 = vadd.f32 %v1510_v18, %v279_v27 }
  0x3f   : > { %v1334_v6 = vpop.eup %1333  ;;  %1181 = vmatprep.mubr.f32.mxu0 %v501_v10  ;;  %v438_v13 = vadd.f32 1.0, %v1332_v12  ;;  %1353 = vpow2.f32 %v423_v58  ;;  %v364_v49 = vsub.f32 0.0, %v1729_v32  ;;  %v1744_v42 = vadd.f32 %v1510_v18, %v295_v39 }
  0x40   : > { %v1336_v15 = vpop.eup %1335  ;;  %1355 = vrcp.f32 %v453_v7  ;;  %v454_v28 = vadd.f32 1.0, %v1334_v6  ;;  %v349_v54 = vsub.f32 0.0, %v1733_v40  ;;  %v365_v56 = vsub.f32 0.0, %v1736_v43 }
  0x41   : > { %v1338_v22 = vpop.eup %1337  ;;  %1357 = vrcp.f32 %v438_v13  ;;  %v439_v23 = vadd.f32 1.0, %v1336_v15  ;;  %v393_v58 = vmul.f32 1.442695, %v348_v25  ;;  %v350_v61 = vsub.f32 0.0, %v1740_v46 }
  0x42   : > { %v1340_v38 = vpop.eup %1339  ;;  %1359 = vrcp.f32 %v454_v28  ;;  %v455_v20 = vadd.f32 1.0, %v1338_v22  ;;  %v425_v3 = vmul.f32 1.442695, %v364_v49  ;;  %v366_v63 = vsub.f32 0.0, %v1744_v42 }
  0x43   : > { %v1342_v0 = vpop.eup %1341  ;;  %1361 = vrcp.f32 %v439_v23  ;;  %v440_v34 = vadd.f32 1.0, %v1340_v38  ;;  %v395_v2 = vmul.f32 1.442695, %v349_v54  ;;  %v427_v7 = vmul.f32 1.442695, %v365_v56 }
  0x44   : > { %v1344_v5 = vpop.eup %1343  ;;  %1363 = vrcp.f32 %v455_v20  ;;  %v456_v35 = vadd.f32 1.0, %v1342_v0  ;;  %v397_v6 = vmul.f32 1.442695, %v350_v61  ;;  %v429_v14 = vmul.f32 1.442695, %v366_v63 }
  0x45   : > { %v1346_v44 = vpop.eup %1345  ;;  %1365 = vrcp.f32 %v440_v34  ;;  %v441_v41 = vadd.f32 1.0, %v1344_v5 }
  0x46   : > { %v1348_v17 = vpop.eup %1347  ;;  %1367 = vrcp.f32 %v456_v35  ;;  %v457_v48 = vadd.f32 1.0, %v1346_v44 }
  0x47   : > { %v1350_v50 = vpop.eup %1349  ;;  %1369 = vrcp.f32 %v441_v41  ;;  %v442_v21 = vadd.f32 1.0, %v1348_v17 }
  0x48   : > { %v1352_v52 = vpop.eup %1351  ;;  %1371 = vrcp.f32 %v457_v48  ;;  %v458_v53 = vadd.f32 1.0, %v1350_v50 }
  0x49   : > { %v1354_v57 = vpop.eup %1353  ;;  %1373 = vrcp.f32 %v442_v21  ;;  %v443_v59 = vadd.f32 1.0, %v1352_v52 }
  0x4a   : > { %v1356_v62 = vpop.eup %1355  ;;  %1375 = vrcp.f32 %v458_v53  ;;  %v459_v18 = vadd.f32 1.0, %v1354_v57 }
  0x4b   : > { %v1358_v1 = vpop.eup %1357  ;;  %v517_v10 = vmul.f32 %v1356_v62, %v1606_v29  ;;  %1377 = vrcp.f32 %v443_v59 }
  0x4c   : > { %v1360_v4 = vpop.eup %1359  ;;  %v502_v12 = vmul.f32 %v1358_v1, %v1623_v45  ;;  %1379 = vrcp.f32 %v459_v18 }
  0x4d   : > { %v1362_v8 = vpop.eup %1361  ;;  %1205 = vmatprep.mubr.f32.mxu1 %v517_v10  ;;  %v518_v9 = vmul.f32 %v1360_v4, %v1630_v51  ;;  %1381 = vpow2.f32 %v393_v58 }
  0x4e   : > { %v1364_v13 = vpop.eup %1363  ;;  %1182 = vmatmul.mubr.f32.gmra.mrb[6].mxu0 %v502_v12  ;;  %v503_v11 = vmul.f32 %v1362_v8, %v1634_v55  ;;  %1383 = vpow2.f32 %v425_v3 }
  0x4f   : > { %v1366_v29 = vpop.eup %1365  ;;  %1206 = vmatmul.mubr.f32.gmra.mrb[6].mxu1 %v518_v9  ;;  %v519_v15 = vmul.f32 %v1364_v13, %v1638_v60  ;;  %1385 = vpow2.f32 %v395_v2 }
  0x50   : > { %v1368_v45 = vpop.eup %1367  ;;  %1184 = vmatprep.mubr.f32.mxu0 %v503_v11  ;;  %v504_v28 = vmul.f32 %v1366_v29, %v1657_v26  ;;  %1387 = vpow2.f32 %v427_v7 }
  0x51   : > { %v1370_v19 = vpop.eup %1369  ;;  %1208 = vmatprep.mubr.f32.mxu1 %v519_v15  ;;  %v520_v51 = vmul.f32 %v1368_v45, %v1661_v31  ;;  %1389 = vpow2.f32 %v397_v6 }
  0x52   : > { %v1372_v22 = vpop.eup %1371  ;;  %1185 = vmatmul.mubr.f32.gmra.mrb[8].mxu0 %v504_v28  ;;  %v505_v55 = vmul.f32 %v1370_v19, %v1666_v36  ;;  %1391 = vpow2.f32 %v429_v14 }
  0x53   : > { %v1374_v23 = vpop.eup %1373  ;;  %1209 = vmatmul.mubr.f32.gmra.mrb[8].mxu1 %v520_v51  ;;  %v521_v60 = vmul.f32 %v1372_v22, %v1670_v47 }
  0x54   : > { %v1376_v27 = vpop.eup %1375  ;;  %1187 = vmatprep.mubr.f32.mxu0 %v505_v55  ;;  %v506_v38 = vmul.f32 %v1374_v23, %v1683_v16 }
  0x55   : > { %v1378_v26 = vpop.eup %1377  ;;  %1211 = vmatprep.mubr.f32.mxu1 %v521_v60  ;;  %v522_v20 = vmul.f32 %v1376_v27, %v1689_v37 }
  0x56   : > { %v1380_v39 = vpop.eup %1379  ;;  %1188 = vmatmul.mubr.f32.gmra.mrb[10].mxu0 %v506_v38  ;;  %v507_v31 = vmul.f32 %v1378_v26, %v1696_v30 }
  0x57   : > { %v1382_v0 = vpop.eup %1381  ;;  %1212 = vmatmul.mubr.f32.gmra.mrb[10].mxu1 %v522_v20  ;;  %v523_v36 = vmul.f32 %v1380_v39, %v1702_v33 }
  0x58   : > { %v1384_v34 = vpop.eup %1383  ;;  %1190 = vmatprep.mubr.f32.mxu0 %v507_v31  ;;  %v444_v5 = vadd.f32 1.0, %v1382_v0 }
  0x59   : > { %v1386_v47 = vpop.eup %1385  ;;  %1214 = vmatprep.mubr.f32.mxu1 %v523_v36  ;;  %v460_v35 = vadd.f32 1.0, %v1384_v34 }
  0x5a   : > { %v1388_v44 = vpop.eup %1387  ;;  %1393 = vrcp.f32 %v444_v5  ;;  %v445_v16 = vadd.f32 1.0, %v1386_v47 }
  0x5b   : > { %v1390_v41 = vpop.eup %1389  ;;  %1395 = vrcp.f32 %v460_v35  ;;  %v461_v37 = vadd.f32 1.0, %v1388_v44 }
  0x5c   : > { %v1392_v25 = vpop.eup %1391  ;;  %1397 = vrcp.f32 %v445_v16  ;;  %v446_v17 = vadd.f32 1.0, %v1390_v41 }
  0x5d   : > { %1399 = vrcp.f32 %v461_v37  ;;  %v462_v30 = vadd.f32 1.0, %v1392_v25 }
  0x5e   : > { %1401 = vrcp.f32 %v446_v17 }
  0x5f   : > { %1403 = vrcp.f32 %v462_v30 }
  0x64   : > { %v1394_v33 = vpop.eup %1393 }
  0x65   : > { %v1396_v48 = vpop.eup %1395  ;;  %v508_v49 = vmul.f32 %v1394_v33, %v1725_v24  ;;  %v1413_v24 = vmov -inf  }
  0x66   : > { %v1398_v50 = vpop.eup %1397  ;;  %v524_v21 = vmul.f32 %v1396_v48, %v1729_v32  ;;  %779 = vst [vmem:[#allocation2 + $0x20] sm:$0xff] %v1413_v24  ;;  %780 = vst [vmem:[#allocation2 + $0x28] sm:$0x3] %v1413_v24  ;;  %v1772_v32 = vld [vmem:[%s1835_s4] ss:$0 sm:$0xff] }
  0x67   : > { %v1400_v54 = vpop.eup %1399  ;;  %1191 = vmatmul.mubr.f32.gmra.mrb[12].mxu0 %v508_v49  ;;  %v509_v52 = vmul.f32 %v1398_v50, %v1733_v40  ;;  %775 = vst [vmem:[#allocation2] sm:$0xff] %v1413_v24  ;;  %776 = vst [vmem:[#allocation2 + $0x8] sm:$0xff] %v1413_v24 }
  0x68   : > { %v1402_v53 = vpop.eup %1401  ;;  %1215 = vmatmul.mubr.f32.gmra.mrb[12].mxu1 %v524_v21  ;;  %v525_v56 = vmul.f32 %v1400_v54, %v1736_v43  ;;  %777 = vst [vmem:[#allocation2 + $0x10] sm:$0x3] %v1413_v24  ;;  %778 = vst [vmem:[#allocation2 + $0x18] sm:$0xff] %v1413_v24 }
  0x69   : > { %v1404_v57 = vpop.eup %1403  ;;  %1193 = vmatprep.mubr.f32.mxu0 %v509_v52  ;;  %v510_v59 = vmul.f32 %v1402_v53, %v1740_v46  ;;  %781 = vst [vmem:[#allocation2 + $0x30] sm:$0xff] %v1413_v24  ;;  %782 = vst [vmem:[#allocation2 + $0x38] sm:$0xff] %v1413_v24 }
  0x6a   : > { %1217 = vmatprep.mubr.f32.mxu1 %v525_v56  ;;  %v526_v58 = vmul.f32 %v1404_v57, %v1744_v42  ;;  %783 = vst [vmem:[#allocation2 + $0x40] sm:$0x3] %v1413_v24  ;;  %784 = vst [vmem:[#allocation2 + $0x48] sm:$0xff] %v1413_v24 }
  0x6b   : > { %1194 = vmatmul.mubr.f32.gmra.mrb[14].mxu0 %v510_v59  ;;  %785 = vst [vmem:[#allocation2 + $0x50] sm:$0xff] %v1413_v24  ;;  %786 = vst [vmem:[#allocation2 + $0x58] sm:$0x3] %v1413_v24 }
  0x6c   : > { %1218 = vmatmul.mubr.f32.gmra.mrb[14].mxu1 %v526_v58  ;;  %787 = vst [vmem:[#allocation2 + $0x60] sm:$0xff] %v1413_v24  ;;  %788 = vst [vmem:[#allocation2 + $0x68] sm:$0xff] %v1413_v24 }
  0x6d   : > { %789 = vst [vmem:[#allocation2 + $0x70] sm:$0x3] %v1413_v24  ;;  %790 = vst [vmem:[#allocation2 + $0x78] sm:$0xff] %v1413_v24 }
  0x6e   : > { %791 = vst [vmem:[#allocation2 + $0x80] sm:$0xff] %v1413_v24  ;;  %792 = vst [vmem:[#allocation2 + $0x88] sm:$0x3] %v1413_v24  ;;  %v862_v8 = vld [vmem:[#allocation2] ss:$2 sm:$0xff] }
  0x6f   : > { %793 = vst [vmem:[#allocation2 + $0x90] sm:$0xff] %v1413_v24  ;;  %794 = vst [vmem:[#allocation2 + $0x98] sm:$0xff] %v1413_v24  ;;  %v896_v9 = vld [vmem:[#allocation2 + $0x1] ss:$2 sm:$0xff]  ;;  %v930_v55 = vld [vmem:[#allocation2 + $0x2] ss:$2 sm:$0xff] }
  0x70   : > { %795 = vst [vmem:[#allocation2 + $0xa0] sm:$0x3] %v1413_v24  ;;  %796 = vst [vmem:[#allocation2 + $0xa8] sm:$0xff] %v1413_v24  ;;  %v963_v15 = vmax.f32 %v862_v8, %v896_v9 }
  0x71   : > { %797 = vst [vmem:[#allocation2 + $0xb0] sm:$0xff] %v1413_v24  ;;  %798 = vst [vmem:[#allocation2 + $0xb8] sm:$0x3] %v1413_v24 }
  0x72   : > { %799 = vst [vmem:[#allocation2 + $0xc0] sm:$0xff] %v1413_v24  ;;  %800 = vst [vmem:[#allocation2 + $0xc8] sm:$0xff] %v1413_v24  ;;  %v980_v38 = vmax.f32 %v963_v15, %v930_v55 }
  0x73   : > { %801 = vst [vmem:[#allocation2 + $0xd0] sm:$0x3] %v1413_v24  ;;  %802 = vst [vmem:[#allocation2 + $0xd8] sm:$0xff] %v1413_v24 }
  0x74   : > { %803 = vst [vmem:[#allocation2 + $0xe0] sm:$0xff] %v1413_v24  ;;  %804 = vst [vmem:[#allocation2 + $0xe8] sm:$0x3] %v1413_v24 }
  0x75   : > { %805 = vst [vmem:[#allocation2 + $0xf0] sm:$0xff] %v1413_v24  ;;  %806 = vst [vmem:[#allocation2 + $0xf8] sm:$0xff] %v1413_v24 }
  0x76   : > { %807 = vst [vmem:[#allocation2 + $0x100] sm:$0x3] %v1413_v24  ;;  %808 = vst [vmem:[#allocation2 + $0x108] sm:$0xff] %v1413_v24 }
  0x77   : > { %809 = vst [vmem:[#allocation2 + $0x110] sm:$0xff] %v1413_v24  ;;  %810 = vst [vmem:[#allocation2 + $0x118] sm:$0x3] %v1413_v24 }
  0x78   : > { %811 = vst [vmem:[#allocation2 + $0x120] sm:$0xff] %v1413_v24  ;;  %812 = vst [vmem:[#allocation2 + $0x128] sm:$0xff] %v1413_v24 }
  0x79   : > { %813 = vst [vmem:[#allocation2 + $0x130] sm:$0x3] %v1413_v24  ;;  %814 = vst [vmem:[#allocation2 + $0x138] sm:$0xff] %v1413_v24 }
  0x7a   : > { %815 = vst [vmem:[#allocation2 + $0x140] sm:$0xff] %v1413_v24  ;;  %816 = vst [vmem:[#allocation2 + $0x148] sm:$0x3] %v1413_v24 }
  0x7b   : > { %817 = vst [vmem:[#allocation2 + $0x150] sm:$0xff] %v1413_v24  ;;  %818 = vst [vmem:[#allocation2 + $0x158] sm:$0xff] %v1413_v24 }
  0x7c   : > { %819 = vst [vmem:[#allocation2 + $0x160] sm:$0x3] %v1413_v24  ;;  %820 = vst [vmem:[#allocation2 + $0x168] sm:$0xff] %v1413_v24 }
  0x7d   : > { %821 = vst [vmem:[#allocation2 + $0x170] sm:$0xff] %v1413_v24  ;;  %822 = vst [vmem:[#allocation2 + $0x178] sm:$0x3] %v1413_v24 }
  0x7e   : > { %823 = vst [vmem:[#allocation2 + $0x180] sm:$0xff] %v1413_v24  ;;  %824 = vst [vmem:[#allocation2 + $0x188] sm:$0xff] %v1413_v24 }
  0x7f   : > { %825 = vst [vmem:[#allocation2 + $0x190] sm:$0x3] %v1413_v24 }
 0x108   : > { %v1174_v40 = vpop.f32.mrb[0].mxu0 }
 0x109   : > { %v622_v43 = vadd.f32 %v1174_v40, %v1772_v32  ;;  %v1198_v46 = vpop.f32.mrb[0].mxu1  ;;  %v616_v42 = vpop.f32.mrb[1].mxu0 }
 0x10a   : > { %v702_v61 = vadd.f32 %v1198_v46, %v1772_v32  ;;  %v617_v62 = vadd.f32 %v1772_v32, %v616_v42  ;;  %v696_v18 = vpop.f32.mrb[1].mxu1 }
 0x10b   : > { %831 = vst [vmem:[#allocation2 + $0x21] sm:$0xff] %v622_v43  ;;  %v697_v3 = vadd.f32 %v1772_v32, %v696_v18 }
 0x10c   : > { %847 = vst [vmem:[#allocation2 + $0xe1] sm:$0xff] %v702_v61  ;;  %830 = vst [vmem:[#allocation2 + $0x19] sm:$0xff] %v617_v62  ;;  %v1177_v63 = vpop.f32.mrb[2].mxu0 }
 0x10d   : > { %846 = vst [vmem:[#allocation2 + $0xd9] sm:$0xff] %v697_v3  ;;  %v632_v1 = vadd.f32 %v1177_v63, %v1772_v32  ;;  %v1201_v10 = vpop.f32.mrb[2].mxu1  ;;  %v626_v2 = vpop.f32.mrb[3].mxu0 }
 0x10e   : > { %v712_v4 = vadd.f32 %v1201_v10, %v1772_v32  ;;  %v627_v12 = vadd.f32 %v1772_v32, %v626_v2  ;;  %v706_v7 = vpop.f32.mrb[3].mxu1 }
 0x10f   : > { %833 = vst [vmem:[#allocation2 + $0x39] sm:$0xff] %v632_v1  ;;  %v707_v6 = vadd.f32 %v1772_v32, %v706_v7 }
 0x110   : > { %849 = vst [vmem:[#allocation2 + $0xf9] sm:$0xff] %v712_v4  ;;  %832 = vst [vmem:[#allocation2 + $0x31] sm:$0xff] %v627_v12  ;;  %v1180_v13 = vpop.f32.mrb[4].mxu0 }
 0x111   : > { %848 = vst [vmem:[#allocation2 + $0xf1] sm:$0xff] %v707_v6  ;;  %v642_v11 = vadd.f32 %v1180_v13, %v1772_v32  ;;  %v1204_v14 = vpop.f32.mrb[4].mxu1  ;;  %v636_v29 = vpop.f32.mrb[5].mxu0 }
 0x112   : > { %v722_v45 = vadd.f32 %v1204_v14, %v1772_v32  ;;  %v637_v28 = vadd.f32 %v1772_v32, %v636_v29  ;;  %v716_v19 = vpop.f32.mrb[5].mxu1 }
 0x113   : > { %v864_v51 = vld [vmem:[#allocation2 + $0x18] ss:$2 sm:$0xff]  ;;  %v898_v22 = vld [vmem:[#allocation2 + $0x19] ss:$2 sm:$0xff]  ;;  %835 = vst [vmem:[#allocation2 + $0x51] sm:$0xff] %v642_v11  ;;  %v717_v23 = vadd.f32 %v1772_v32, %v716_v19 }
 0x114   : > { %v964_v60 = vmax.f32 %v864_v51, %v898_v22  ;;  %851 = vst [vmem:[#allocation2 + $0x111] sm:$0xff] %v722_v45  ;;  %834 = vst [vmem:[#allocation2 + $0x49] sm:$0xff] %v637_v28  ;;  %v932_v27 = vld [vmem:[#allocation2 + $0x1a] ss:$2 sm:$0xff] }
 0x115   : > { %850 = vst [vmem:[#allocation2 + $0x109] sm:$0xff] %v717_v23 }
 0x116   : > { %v981_v26 = vmax.f32 %v964_v60, %v932_v27 }
 0x117   : > { %v866_v20 = vld [vmem:[#allocation2 + $0x30] ss:$2 sm:$0xff]  ;;  %v900_v39 = vld [vmem:[#allocation2 + $0x31] ss:$2 sm:$0xff] }
 0x118   : > { %v965_v31 = vmax.f32 %v866_v20, %v900_v39  ;;  %v934_v0 = vld [vmem:[#allocation2 + $0x32] ss:$2 sm:$0xff]  ;;  %v997_v36 = vmax.f32 %v980_v38, %v981_v26  ;;  %v916_v56 = vld [vmem:[#allocation2 + $0xf1] ss:$2 sm:$0xff] }
 0x119   : > { %v882_v53 = vld [vmem:[#allocation2 + $0xf0] ss:$2 sm:$0xff] }
 0x11a   : > { %v1787_v34 = vmax.f32 %v965_v31, %v934_v0  ;;  %v973_v61 = vmax.f32 %v882_v53, %v916_v56  ;;  %v950_v1 = vld [vmem:[#allocation2 + $0xf2] ss:$2 sm:$0xff] }
 0x11b   : > { %v868_v17 = vld [vmem:[#allocation2 + $0x48] ss:$2 sm:$0xff]  ;;  %v902_v30 = vld [vmem:[#allocation2 + $0x49] ss:$2 sm:$0xff] }
 0x11c   : > { %v1005_v5 = vmax.f32 %v997_v36, %v1787_v34  ;;  %v884_v48 = vld [vmem:[#allocation2 + $0x108] ss:$2 sm:$0xff]  ;;  %v918_v49 = vld [vmem:[#allocation2 + $0x109] ss:$2 sm:$0xff]  ;;  %v966_v57 = vmax.f32 %v868_v17, %v902_v30  ;;  %v1808_v15 = vmax.f32 %v973_v61, %v950_v1  ;;  %v914_v1 = vld [vmem:[#allocation2 + $0xd9] ss:$2 sm:$0xff] }
 0x11d   : > { %v974_v40 = vmax.f32 %v884_v48, %v918_v49  ;;  %v952_v46 = vld [vmem:[#allocation2 + $0x10a] ss:$2 sm:$0xff] }
 0x11e   : > { %1013 = vst [vmem:[%s1792_s17] sm:$0xff] %v1005_v5  ;;  %v936_v62 = vld [vmem:[#allocation2 + $0x4a] ss:$2 sm:$0xff] }
 0x11f   : > { %v983_v10 = vmax.f32 %v966_v57, %v936_v62  ;;  %v991_v7 = vmax.f32 %v974_v40, %v952_v46 }
 0x121   : > { %v1183_v47 = vpop.f32.mrb[6].mxu0  ;;  %v998_v19 = vmax.f32 %v1787_v34, %v983_v10  ;;  %v1002_v22 = vmax.f32 %v1808_v15, %v991_v7 }
 0x122   : > { %v652_v35 = vadd.f32 %v1183_v47, %v1772_v32  ;;  %v1207_v44 = vpop.f32.mrb[6].mxu1  ;;  %v646_v16 = vpop.f32.mrb[7].mxu0 }
 0x123   : > { %v732_v41 = vadd.f32 %v1207_v44, %v1772_v32  ;;  %v647_v37 = vadd.f32 %v1772_v32, %v646_v16  ;;  %v726_v25 = vpop.f32.mrb[7].mxu1 }
 0x124   : > { %837 = vst [vmem:[#allocation2 + $0x69] sm:$0xff] %v652_v35  ;;  %v727_v33 = vadd.f32 %v1772_v32, %v726_v25 }
 0x125   : > { %853 = vst [vmem:[#allocation2 + $0x129] sm:$0xff] %v732_v41  ;;  %836 = vst [vmem:[#allocation2 + $0x61] sm:$0xff] %v647_v37  ;;  %v1186_v50 = vpop.f32.mrb[8].mxu0 }
 0x126   : > { %852 = vst [vmem:[#allocation2 + $0x121] sm:$0xff] %v727_v33  ;;  %v662_v21 = vadd.f32 %v1186_v50, %v1772_v32  ;;  %v1210_v54 = vpop.f32.mrb[8].mxu1  ;;  %v656_v52 = vpop.f32.mrb[9].mxu0 }
 0x127   : > { %v742_v59 = vadd.f32 %v1210_v54, %v1772_v32  ;;  %v657_v58 = vadd.f32 %v1772_v32, %v656_v52  ;;  %v736_v24 = vpop.f32.mrb[9].mxu1 }
 0x128   : > { %839 = vst [vmem:[#allocation2 + $0x81] sm:$0xff] %v662_v21  ;;  %v737_v43 = vadd.f32 %v1772_v32, %v736_v24 }
 0x129   : > { %855 = vst [vmem:[#allocation2 + $0x141] sm:$0xff] %v742_v59  ;;  %838 = vst [vmem:[#allocation2 + $0x79] sm:$0xff] %v657_v58  ;;  %v1189_v42 = vpop.f32.mrb[10].mxu0 }
 0x12a   : > { %854 = vst [vmem:[#allocation2 + $0x139] sm:$0xff] %v737_v43  ;;  %v672_v18 = vadd.f32 %v1189_v42, %v1772_v32  ;;  %v1213_v3 = vpop.f32.mrb[10].mxu1  ;;  %v666_v63 = vpop.f32.mrb[11].mxu0 }
 0x12b   : > { %v752_v2 = vadd.f32 %v1213_v3, %v1772_v32  ;;  %v667_v4 = vadd.f32 %v1772_v32, %v666_v63  ;;  %v746_v12 = vpop.f32.mrb[11].mxu1  ;;  %v880_v63 = vld [vmem:[#allocation2 + $0xd8] ss:$2 sm:$0xff] }
 0x12c   : > { %v870_v8 = vld [vmem:[#allocation2 + $0x60] ss:$2 sm:$0xff]  ;;  %v904_v9 = vld [vmem:[#allocation2 + $0x61] ss:$2 sm:$0xff]  ;;  %841 = vst [vmem:[#allocation2 + $0x99] sm:$0xff] %v672_v18  ;;  %v747_v6 = vadd.f32 %v1772_v32, %v746_v12 }
 0x12d   : > { %v967_v13 = vmax.f32 %v870_v8, %v904_v9  ;;  %v886_v11 = vld [vmem:[#allocation2 + $0x120] ss:$2 sm:$0xff]  ;;  %v920_v14 = vld [vmem:[#allocation2 + $0x121] ss:$2 sm:$0xff]  ;;  %857 = vst [vmem:[#allocation2 + $0x159] sm:$0xff] %v752_v2  ;;  %840 = vst [vmem:[#allocation2 + $0x91] sm:$0xff] %v667_v4 }
 0x12e   : > { %v954_v29 = vld [vmem:[#allocation2 + $0x122] ss:$2 sm:$0xff]  ;;  %v975_v28 = vmax.f32 %v886_v11, %v920_v14  ;;  %856 = vst [vmem:[#allocation2 + $0x151] sm:$0xff] %v747_v6 }
 0x12f   : > { %v938_v45 = vld [vmem:[#allocation2 + $0x62] ss:$2 sm:$0xff] }
 0x130   : > { %v984_v51 = vmax.f32 %v967_v13, %v938_v45  ;;  %v992_v55 = vmax.f32 %v975_v28, %v954_v29  ;;  %v872_v23 = vld [vmem:[#allocation2 + $0x78] ss:$2 sm:$0xff]  ;;  %v906_v60 = vld [vmem:[#allocation2 + $0x79] ss:$2 sm:$0xff]  ;;  %v972_v13 = vmax.f32 %v880_v63, %v914_v1 }
 0x131   : > { %v968_v38 = vmax.f32 %v872_v23, %v906_v60  ;;  %v888_v26 = vld [vmem:[#allocation2 + $0x138] ss:$2 sm:$0xff]  ;;  %v922_v20 = vld [vmem:[#allocation2 + $0x139] ss:$2 sm:$0xff] }
 0x132   : > { %v1006_v27 = vmax.f32 %v998_v19, %v984_v51  ;;  %v956_v39 = vld [vmem:[#allocation2 + $0x13a] ss:$2 sm:$0xff]  ;;  %v1010_v31 = vmax.f32 %v1002_v22, %v992_v55  ;;  %v976_v36 = vmax.f32 %v888_v26, %v922_v20 }
 0x133   : > { %v940_v0 = vld [vmem:[#allocation2 + $0x7a] ss:$2 sm:$0xff] }
 0x134   : > { %1014 = vst [vmem:[%s1792_s17 + $0x8] sm:$0xff] %v1006_v27  ;;  %v985_v5 = vmax.f32 %v968_v38, %v940_v0  ;;  %1018 = vst [vmem:[%s1792_s17 + $0x28] sm:$0xff] %v1010_v31  ;;  %v993_v47 = vmax.f32 %v976_v36, %v956_v39  ;;  %v874_v34 = vld [vmem:[#allocation2 + $0x90] ss:$2 sm:$0xff]  ;;  %v908_v35 = vld [vmem:[#allocation2 + $0x91] ss:$2 sm:$0xff] }
 0x135   : > { %v969_v44 = vmax.f32 %v874_v34, %v908_v35  ;;  %v890_v16 = vld [vmem:[#allocation2 + $0x150] ss:$2 sm:$0xff]  ;;  %v924_v41 = vld [vmem:[#allocation2 + $0x151] ss:$2 sm:$0xff] }
 0x136   : > { %v958_v37 = vld [vmem:[#allocation2 + $0x152] ss:$2 sm:$0xff]  ;;  %v977_v17 = vmax.f32 %v890_v16, %v924_v41  ;;  %v999_v30 = vmax.f32 %v984_v51, %v985_v5  ;;  %v1003_v48 = vmax.f32 %v992_v55, %v993_v47 }
 0x137   : > { %v942_v25 = vld [vmem:[#allocation2 + $0x92] ss:$2 sm:$0xff] }
 0x138   : > { %v986_v33 = vmax.f32 %v969_v44, %v942_v25  ;;  %v994_v49 = vmax.f32 %v977_v17, %v958_v37  ;;  %v948_v14 = vld [vmem:[#allocation2 + $0xda] ss:$2 sm:$0xff] }
 0x139   : > { %v989_v60 = vmax.f32 %v972_v13, %v948_v14 }
 0x13a   : > { %v1007_v50 = vmax.f32 %v999_v30, %v986_v33  ;;  %v1011_v21 = vmax.f32 %v1003_v48, %v994_v49  ;;  %v1192_v54 = vpop.f32.mrb[12].mxu0 }
 0x13b   : > { %v682_v52 = vadd.f32 %v1192_v54, %v1772_v32  ;;  %v1216_v53 = vpop.f32.mrb[12].mxu1  ;;  %v676_v56 = vpop.f32.mrb[13].mxu0 }
 0x13c   : > { %1015 = vst [vmem:[%s1792_s17 + $0x10] sm:$0xff] %v1007_v50  ;;  %1019 = vst [vmem:[%s1792_s17 + $0x30] sm:$0xff] %v1011_v21  ;;  %v762_v57 = vadd.f32 %v1216_v53, %v1772_v32  ;;  %v677_v59 = vadd.f32 %v1772_v32, %v676_v56  ;;  %v756_v58 = vpop.f32.mrb[13].mxu1 }
 0x13d   : > { %843 = vst [vmem:[#allocation2 + $0xb1] sm:$0xff] %v682_v52  ;;  %v757_v24 = vadd.f32 %v1772_v32, %v756_v58 }
 0x13e   : > { %859 = vst [vmem:[#allocation2 + $0x171] sm:$0xff] %v762_v57  ;;  %842 = vst [vmem:[#allocation2 + $0xa9] sm:$0xff] %v677_v59  ;;  %v1195_v40 = vpop.f32.mrb[14].mxu0 }
 0x13f   : > { %858 = vst [vmem:[#allocation2 + $0x169] sm:$0xff] %v757_v24  ;;  %v692_v43 = vadd.f32 %v1195_v40, %v1772_v32  ;;  %v1219_v46 = vpop.f32.mrb[14].mxu1  ;;  %v686_v42 = vpop.f32.mrb[15].mxu0 }
 0x140   : > { %v772_v61 = vadd.f32 %v1219_v46, %v1772_v32  ;;  %v687_v62 = vadd.f32 %v1772_v32, %v686_v42  ;;  %v766_v18 = vpop.f32.mrb[15].mxu1 }
 0x141   : > { %845 = vst [vmem:[#allocation2 + $0xc9] sm:$0xff] %v692_v43  ;;  %v767_v3 = vadd.f32 %v1772_v32, %v766_v18 }
 0x142   : > { %861 = vst [vmem:[#allocation2 + $0x189] sm:$0xff] %v772_v61  ;;  %844 = vst [vmem:[#allocation2 + $0xc1] sm:$0xff] %v687_v62 }
 0x143   : > { %860 = vst [vmem:[#allocation2 + $0x181] sm:$0xff] %v767_v3 }
 0x145   : > { %v876_v10 = vld [vmem:[#allocation2 + $0xa8] ss:$2 sm:$0xff]  ;;  %v910_v2 = vld [vmem:[#allocation2 + $0xa9] ss:$2 sm:$0xff] }
 0x146   : > { %v970_v4 = vmax.f32 %v876_v10, %v910_v2  ;;  %v892_v12 = vld [vmem:[#allocation2 + $0x168] ss:$2 sm:$0xff]  ;;  %v926_v7 = vld [vmem:[#allocation2 + $0x169] ss:$2 sm:$0xff] }
 0x147   : > { %v960_v8 = vld [vmem:[#allocation2 + $0x16a] ss:$2 sm:$0xff]  ;;  %v978_v6 = vmax.f32 %v892_v12, %v926_v7 }
 0x148   : > { %v944_v9 = vld [vmem:[#allocation2 + $0xaa] ss:$2 sm:$0xff] }
 0x149   : > { %v987_v11 = vmax.f32 %v970_v4, %v944_v9  ;;  %v995_v29 = vmax.f32 %v978_v6, %v960_v8  ;;  %v878_v45 = vld [vmem:[#allocation2 + $0xc0] ss:$2 sm:$0xff]  ;;  %v912_v28 = vld [vmem:[#allocation2 + $0xc1] ss:$2 sm:$0xff] }
 0x14a   : > { %v971_v32 = vmax.f32 %v878_v45, %v912_v28  ;;  %v894_v19 = vld [vmem:[#allocation2 + $0x180] ss:$2 sm:$0xff]  ;;  %v928_v51 = vld [vmem:[#allocation2 + $0x181] ss:$2 sm:$0xff] }
 0x14b   : > { %v962_v22 = vld [vmem:[#allocation2 + $0x182] ss:$2 sm:$0xff]  ;;  %v979_v23 = vmax.f32 %v894_v19, %v928_v51  ;;  %v1000_v27 = vmax.f32 %v986_v33, %v987_v11  ;;  %v1004_v26 = vmax.f32 %v994_v49, %v995_v29 }
 0x14c   : > { %v946_v55 = vld [vmem:[#allocation2 + $0xc2] ss:$2 sm:$0xff] }
 0x14d   : > { %v988_v38 = vmax.f32 %v971_v32, %v946_v55  ;;  %v996_v20 = vmax.f32 %v979_v23, %v962_v22 }
 0x14f   : > { %v1001_v39 = vmax.f32 %v988_v38, %v989_v60  ;;  %v1008_v31 = vmax.f32 %v1000_v27, %v988_v38  ;;  %v1012_v0 = vmax.f32 %v1004_v26, %v996_v20 }
 0x151   : > { %v1009_v36 = vmax.f32 %v1001_v39, %v1808_v15  ;;  %1016 = vst [vmem:[%s1792_s17 + $0x18] sm:$0xff] %v1008_v31  ;;  %1020 = vst [vmem:[%s1792_s17 + $0x38] sm:$0xff] %v1012_v0 }
 0x153   : > { %1017 = vst [vmem:[%s1792_s17 + $0x20] sm:$0xff] %v1009_v36 }
 0x154 PF: > { %s15_s18 = sadd.s32 1, %s1411_s18  }
 0x155   : > { %p12_p4 = scmp.ge.s32.totalorder %s15_s18, 4  }
 0x157   :  { %14 = sbr.rel (!%p12_p4) target bundleno = 1 (0x1), region = 121 }

</bundles_post_ra>
